<compile_context>
chip_gen: v7x
topology: tpu7x:2x2x1
jax: 0.10.0
libtpu: 0.0.40
codegen_flags: <defaults>
</compile_context>

<pallas_src>
import numpy as np

import jax
import jax.numpy as jnp
from jax.experimental import pallas as pl
from jax.experimental.pallas import tpu as pltpu


# ------------------------------ kernel ------------------------------

def _drop_path_kernel(scale_ref, x_ref, o_ref):
    """One (batch block, feature tile): o = x * scale[b]; scale in {0, 1/keep}."""
    o_ref[...] = (x_ref[...] * scale_ref[...]).astype(o_ref.dtype)


# --------------------------- tile selection ---------------------------

_LIVE_VMEM_BUDGET = 16 * 1024 * 1024   # bytes for the 2 in + 2 out pipelined blocks
_VMEM_LIMIT_BYTES = 32 * 1024 * 1024   # scoped VMEM limit; <= physical on every gen


def _round_up(n, m):
    return ((n + m - 1) // m) * m


def _choose_tiles(batch, feat, itemsize):
    # Batch tile: full batch when small, otherwise 256-row blocks (multiple of 8).
    bt = batch if batch <= 256 else 256
    # Lane tile: biggest multiple of 128 such that 4 * bt * tile * itemsize fits
    # the live-VMEM budget (Pallas double-buffers both the input and the output).
    max_lanes = _LIVE_VMEM_BUDGET // (4 * bt * itemsize)
    tile = max(128, (max_lanes // 128) * 128)
    tile = min(tile, _round_up(feat, 128))
    return bt, tile


# ------------------------------ wrapper ------------------------------

def drop_path(x, drop_prob: float = 0.0, training: bool = False,
              *, key=None, seed: int = 0):
    """Pallas TPU drop_path. Matches the PyTorch forward semantics."""
    if drop_prob == 0.0 or not training:
        return x                                   # identity fast-path, like torch
    assert 0.0 < drop_prob < 1.0
    keep_prob = 1.0 - drop_prob

    orig_shape = x.shape
    Bn = orig_shape[0]
    F = 1
    for d in orig_shape[1:]:
        F *= int(d)

    # Per-sample Bernoulli(keep_prob) scale, equivalent to the torch reference's
    # floor(keep_prob + rand) / keep_prob, computed once (hoisted out of the tiles).
    if key is None:
        key = jax.random.PRNGKey(seed)
    u = jax.random.uniform(key, (Bn, 1), dtype=jnp.float32)
    scale = (jnp.floor(keep_prob + u) * (1.0 / keep_prob)).astype(x.dtype)

    x2 = x.reshape(Bn, F)
    itemsize = jnp.dtype(x.dtype).itemsize
    bt, tile = _choose_tiles(Bn, F, itemsize)

    # Pad so the tiles divide exactly: keeps every store lane-dense and unmasked.
    Bp = _round_up(Bn, bt)
    Fp = _round_up(F, tile)
    padded = (Bp, Fp) != (Bn, F)
    if padded:
        x2 = jnp.pad(x2, ((0, Bp - Bn), (0, Fp - F)))
        scale = jnp.pad(scale, ((0, Bp - Bn), (0, 0)))

    grid = (Bp // bt, Fp // tile)

    out = pl.pallas_call(
        _drop_path_kernel,
        out_shape=jax.ShapeDtypeStruct((Bp, Fp), x.dtype),
        grid=grid,
        in_specs=[
            # (bt, 1) per-sample scale; constant over the feature axis, so it is
            # only re-DMA'd when the batch block changes.
            pl.BlockSpec((bt, 1), lambda bi, fi: (bi, 0)),
            pl.BlockSpec((bt, tile), lambda bi, fi: (bi, fi)),
        ],
        out_specs=pl.BlockSpec((bt, tile), lambda bi, fi: (bi, fi)),
        compiler_params=pltpu.CompilerParams(
            dimension_semantics=("parallel", "parallel"),
            vmem_limit_bytes=_VMEM_LIMIT_BYTES,
        ),
        cost_estimate=pl.CostEstimate(
            flops=Bn * F,
            transcendentals=0,
            bytes_accessed=2 * Bn * F * itemsize,
        ),
    )(scale, x2)

    if padded:
        out = out[:Bn, :F]
    return out.reshape(orig_shape)


class DropPath:
    """Thin module-style wrapper mirroring the PyTorch nn.Module."""

    def __init__(self, drop_prob=None):
        self.drop_prob = 0.0 if drop_prob is None else float(drop_prob)
        self.training = True

    def __call__(self, x, *, key=None, seed: int = 0):
        return drop_path(x, self.drop_prob, self.training, key=key, seed=seed)


# ------------------------------ demo ------------------------------

if __name__ == "__main__":
    key = jax.random.PRNGKey(0)
    k_data, k_drop = jax.random.split(key)

    B, C, H, W = 2, 4, 16, 16                      # small conv-style residual tensor
    x = jax.random.normal(k_data, (B, C, H, W), jnp.float32)

    drop_prob = 0.25
    keep_prob = 1.0 - drop_prob

    # training mode: stochastic depth applied per sample
    y = drop_path(x, drop_prob=drop_prob, training=True, key=k_drop)
    y = jax.block_until_ready(y)
    assert y.shape == x.shape and y.dtype == x.dtype

    # eval mode (or drop_prob == 0): exact identity, like the torch early-exit
    y_eval = drop_path(x, drop_prob=drop_prob, training=False)
    assert y_eval is x

    # invariant: each sample is either fully dropped (zeros) or scaled by 1/keep_prob
    xn, yn = np.asarray(x), np.asarray(y)
    for b in range(B):
        dropped = np.allclose(yn[b], 0.0)
        kept = np.allclose(yn[b], xn[b] / keep_prob, rtol=1e-5, atol=1e-5)
        assert dropped or kept, "drop_path output is neither dropped nor scaled-kept"

    # second sanity check with a bigger, non-128-multiple feature dim (pad path)
    x2 = jax.random.normal(k_data, (3, 7, 33), jnp.float32)
    y2 = jax.block_until_ready(
        drop_path(x2, drop_prob=0.5, training=True, seed=7))
    x2n, y2n = np.asarray(x2), np.asarray(y2)
    for b in range(3):
        dropped = np.allclose(y2n[b], 0.0)
        kept = np.allclose(y2n[b], x2n[b] / 0.5, rtol=1e-5, atol=1e-5)
        assert dropped or kept

    print("KERNEL_OK")
</pallas_src>

<mosaic_0001>
module attributes {stable_mosaic.version = 11 : i64} {
  func.func @_drop_path_kernel(%arg0: i32, %arg1: i32, %arg2: memref<2x1xf32, #tpu.memory_space<vmem>>, %arg3: memref<2x1024xf32, #tpu.memory_space<vmem>>, %arg4: memref<2x1024xf32, #tpu.memory_space<vmem>>) attributes {dimension_semantics = [#tpu.dimension_semantics<parallel>, #tpu.dimension_semantics<parallel>], iteration_bounds = array<i64: 1, 1>, scalar_prefetch = 0 : i64, scratch_operands = 0 : i64, tpu.core_type = #tpu.core_type<tc>, window_params = [{transform_indices = @transform_0, window_bounds = array<i64: 2, 1>}, {transform_indices = @transform_1, window_bounds = array<i64: 2, 1024>}, {transform_indices = @transform_2, window_bounds = array<i64: 2, 1024>}]} {
    %c0 = arith.constant 0 : index
    %c0_0 = arith.constant 0 : index
    %0 = vector.load %arg3[%c0, %c0_0] : memref<2x1024xf32, #tpu.memory_space<vmem>>, vector<2x1024xf32>
    %c0_1 = arith.constant 0 : index
    %c0_2 = arith.constant 0 : index
    %1 = vector.load %arg2[%c0_1, %c0_2] : memref<2x1xf32, #tpu.memory_space<vmem>>, vector<2x1xf32>
    %2 = vector.broadcast %1 : vector<2x1xf32> to vector<2x1024xf32>
    %3 = arith.mulf %0, %2 : vector<2x1024xf32>
    %c0_3 = arith.constant 0 : index
    %c0_4 = arith.constant 0 : index
    %4 = vector.load %arg4[%c0_3, %c0_4] : memref<2x1024xf32, #tpu.memory_space<vmem>>, vector<2x1024xf32>
    tpu.vector_store %arg4[%c0_3, %c0_4], %3 {strides = array<i32>} : memref<2x1024xf32, #tpu.memory_space<vmem>>, vector<2x1024xf32>,
    return
  }
  func.func @transform_0(%arg0: i32, %arg1: i32) -> (i32, i32) {
    %c0_i32 = arith.constant 0 : i32
    %c0_i32_0 = arith.constant 0 : i32
    return %arg0, %c0_i32 : i32, i32
  }
  func.func @transform_1(%arg0: i32, %arg1: i32) -> (i32, i32) {
    %c0_i32 = arith.constant 0 : i32
    return %arg0, %arg1 : i32, i32
  }
  func.func @transform_2(%arg0: i32, %arg1: i32) -> (i32, i32) {
    %c0_i32 = arith.constant 0 : i32
    return %arg0, %arg1 : i32, i32
  }
}

</mosaic_0001>

<bundles_post_ra>
// kernel: tpu_custom_call.1
= control target key start
LH: loop header
LB: loop body
LE: loop exit
PB: predicated region body
PF: predicated region fallthrough
CT: control target
= control target key end

     0   :  { %7 = vsyncpa [#allocation3], 0  ;;  %s157_s0 = inlined_call_operand.vmem [shape: f32[2,1], index: 0, kind: input, shape index: {}]   ;;  %s158_s1 = inlined_call_operand.hbm [shape: f32[2,1024], index: 1, kind: input, shape index: {}]   ;;  %s159_s2 = inlined_call_operand.hbm [shape: f32[2,1024], index: 2, kind: output, shape index: {}]  }
   0x1   :  { %8 = vsyncpa [#allocation4], 0  ;;  %s111_s9 = smov [#allocation2]   ;;  %s63_s13 = scalar_lea.hbm %s158_s1, 256 }
   0x2   :  { %s17_s10 = sshll.u32 %s111_s9, 4  ;;  %p64_p0 = scmp.ne.s32.totalorder %s158_s1, %s63_s13  ;;  %s18_s10 = int_to_ptr.vmem [resolvable:$true] %s17_s10 }
   0x3   :  { %p67_p1 = scmp.lt.u32.totalorder %s63_s13, %s158_s1 }
   0x5   :  { %p69_p2 = pnand %p67_p1, %p64_p0 }
   0x7   :  { %72 = shalt.err (!%p69_p2)
}
   0x8   :  { %s73_s18 = scalar_lea.vmem %s18_s10, 256  ;;  %p78_p4 = scmp.lt.s32.totalorder %s18_s10, %s18_s10 }
   0x9   :  { %p74_p3 = scmp.ne.s32.totalorder %s18_s10, %s73_s18  ;;  %p79_p5 = scmp.lt.s32.totalorder %s73_s18, %s73_s18 }
   0xb   :  { %p80_p6 = por %p79_p5, %p78_p4 }
   0xd   :  { %p81_p7 = pnand %p80_p6, %p74_p3 }
   0xf   :  { %84 = shalt.err (!%p81_p7)
}
  0x10   :  { %20 = dma.hbm_to_vmem [thread:$0]  %s158_s1, 256, %s18_s10, [#allocation3]  }
  0x11   :  { %107 = dma.done.wait [#allocation3], 256  }
  0x12   :  { %108 = vsyncadd [#allocation3], 4294967040  ;;  %v112_v0 = vmov 0   ;;  %v26_v1 = vld [vmem:[%s157_s0] sm:$0x3]  ;;  %v34_v4 = vlaneseq  ;;  %v25_v10 = vld [vmem:[#allocation2 + $0x8] sm:$0xff] }
  0x13   :  { %62 = vset.pattern.permute.xlu0 %v112_v0  ;;  %v113_v2 = vmov 269488144   ;;  %v24_v9 = vld [vmem:[#allocation2] sm:$0xff]  ;;  %s114_s23 = smov [#allocation5]  }
  0x14   :  { %29 = vperm.xlu0 %62, %v26_v1   ;;  %v32_v3 = vunpack.c.l.s4 %v113_v2  ;;  %v35_v6 = vshrl.u32 %v34_v4, 7  ;;  %s49_s1 = sshll.u32 %s114_s23, 4  ;;  %s50_s1 = int_to_ptr.vmem [resolvable:$true] %s49_s1 }
  0x15   :  { %s85_s24 = scalar_lea.vmem %s50_s1, 256  ;;  %p90_p9 = scmp.lt.s32.totalorder %s50_s1, %s50_s1 }
  0x16   :  { %v33_v5 = vunpack.c.0.s8 %v32_v3  ;;  %p86_p8 = scmp.ne.s32.totalorder %s50_s1, %s85_s24  ;;  %p91_p10 = scmp.lt.s32.totalorder %s85_s24, %s85_s24 }
  0x18   :  { %v36_v7 = vsub.s32 %v33_v5, %v35_v6  ;;  %p92_p11 = por %p91_p10, %p90_p9 }
  0x1a   :  { %p93_p12 = pnand %p92_p11, %p86_p8 }
  0x93   :  { %v30_v8 = vpop.permute.xlu0 %29 }
  0x94   :  { %v37_v11 = vrot.slane %v30_v8, %v36_v7 }
  0x96   :  { %v39_v12 = vmul.f32 %v37_v11, %v24_v9  ;;  %v40_v13 = vmul.f32 %v37_v11, %v25_v10 }
  0x98   :  { %41 = vst [vmem:[#allocation5] sm:$0xff] %v39_v12  ;;  %42 = vst [vmem:[#allocation5 + $0x8] sm:$0xff] %v40_v13 }
  0x99   :  { %96 = shalt.err (!%p93_p12)
}
  0x9a   :  { %s97_s26 = scalar_lea.hbm %s159_s2, 256 }
  0x9b   :  { %p98_p13 = scmp.ne.s32.totalorder %s159_s2, %s97_s26  ;;  %p101_p0 = scmp.lt.u32.totalorder %s97_s26, %s159_s2 }
  0x9d   :  { %p103_p1 = pnand %p101_p0, %p98_p13 }
  0x9f   :  { %106 = shalt.err (!%p103_p1)
}
  0xa0   :  { %52 = dma.vmem_to_hbm [thread:$0]  %s50_s1, 256, %s159_s2, [#allocation4]  }
  0xa1   :  { %109 = dma.done.wait [#allocation4], 256  }
  0xa2   :  { %110 = vsyncadd [#allocation4], 4294967040 }
  0xa3   :  { %56 = vsyncpa [#allocation3], 1 }
  0xa4   :  { %57 = vsyncpa [#allocation4], 1 }

</bundles_post_ra>
